<compile_context>
chip_gen: v6e
topology: v6e:2x2x1
jax: 0.10.0
libtpu: 0.0.40
codegen_flags: <defaults>
</compile_context>

<pallas_src>
import functools

import jax
import jax.numpy as jnp
from jax import lax
from jax.experimental import pallas as pl
from jax.experimental.pallas import tpu as pltpu


def _round_up(x, m):
    return ((x + m - 1) // m) * m


def _layernorm_kernel(x_ref, w_ref, b_ref, o_ref, *, eps, h_valid, h_pad):
    # x_ref: (row_tile, h_pad) tile of rows; w_ref/b_ref: (1, h_pad) params.
    x = x_ref[...].astype(jnp.float32)
    inv_h = jnp.float32(1.0 / h_valid)
    # Padded columns of x are zero, so the row sum over h_pad is the true sum.
    mean = jnp.sum(x, axis=-1, keepdims=True) * inv_h
    xc = x - mean
    if h_valid != h_pad:
        # Mask padded columns out of the variance (they hold -mean, not 0).
        col = lax.broadcasted_iota(jnp.int32, (1, h_pad), 1)
        xc_m = jnp.where(col < h_valid, xc, 0.0)
    else:
        xc_m = xc
    var = jnp.sum(xc_m * xc_m, axis=-1, keepdims=True) * inv_h  # biased, like PyTorch
    inv = lax.rsqrt(var + jnp.float32(eps))
    y = xc * inv
    # Padded columns: weight=0, bias=0 -> y=0 there (sliced off in wrapper).
    y = y * w_ref[...].astype(jnp.float32) + b_ref[...].astype(jnp.float32)
    o_ref[...] = y.astype(o_ref.dtype)


def _choose_row_tile(n_rows, h_pad, in_itemsize, target_f32_bytes=4 << 20):
    """Pick a row tile.

    Sized so the f32 working set (the dominant in-kernel temporaries) is
    ~target_f32_bytes per tile, rounded to the dtype's native sublane count,
    then rebalanced so the grid has an even number of reasonably equal steps
    (v7x megacore) and no tiny ragged tail.
    """
    sublane = max(8, 32 // max(1, in_itemsize))  # 8 (f32) / 16 (bf16) / 32 (int8)
    rows = target_f32_bytes // max(1, h_pad * 4)
    rows = max(sublane, (int(rows) // sublane) * sublane)
    rows_needed = _round_up(max(n_rows, 1), sublane)
    rows = min(rows, rows_needed)

    steps = pl.cdiv(max(n_rows, 1), rows)
    if steps == 1 and n_rows > sublane:
        steps = 2                      # allow both TCs to participate
    elif steps > 1 and steps % 2 == 1:
        steps += 1                     # even step count for 2-TC balance
    rows = max(sublane, _round_up(pl.cdiv(max(n_rows, 1), steps), sublane))
    return rows


def layer_norm_pallas(x, weight=None, bias=None, eps=1e-5, row_tile=None):
    """LayerNorm over the last dimension of x.

    x:      (..., H)
    weight: (H,) or None (treated as ones)   -- elementwise_affine
    bias:   (H,) or None (treated as zeros)
    """
    orig_shape = x.shape
    H = orig_shape[-1]
    x2 = x.reshape(-1, H)
    R = x2.shape[0]

    if weight is None:
        weight = jnp.ones((H,), dtype=x.dtype)
    if bias is None:
        bias = jnp.zeros((H,), dtype=x.dtype)
    weight = weight.reshape(-1)
    bias = bias.reshape(-1)

    # Lane-dense last dim: pad H up to a multiple of 128 (zeros).
    H_pad = _round_up(H, 128)
    if H_pad != H:
        pad = H_pad - H
        x2 = jnp.pad(x2, ((0, 0), (0, pad)))
        weight = jnp.pad(weight, ((0, pad),))
        bias = jnp.pad(bias, ((0, pad),))
    w2 = weight.reshape(1, H_pad)
    b2 = bias.reshape(1, H_pad)

    itemsize = jnp.dtype(x.dtype).itemsize
    if row_tile is None:
        row_tile = _choose_row_tile(R, H_pad, itemsize)

    grid = (pl.cdiv(R, row_tile),)   # ragged last block handled by Pallas

    out = pl.pallas_call(
        functools.partial(_layernorm_kernel, eps=float(eps), h_valid=H, h_pad=H_pad),
        out_shape=jax.ShapeDtypeStruct((R, H_pad), x.dtype),
        grid_spec=pltpu.PrefetchScalarGridSpec(
            num_scalar_prefetch=0,
            grid=grid,
            in_specs=[
                pl.BlockSpec((row_tile, H_pad), lambda i: (i, 0)),
                pl.BlockSpec((1, H_pad), lambda i: (0, 0)),
                pl.BlockSpec((1, H_pad), lambda i: (0, 0)),
            ],
            out_specs=pl.BlockSpec((row_tile, H_pad), lambda i: (i, 0)),
        ),
        compiler_params=pltpu.CompilerParams(
            dimension_semantics=("parallel",),
            vmem_limit_bytes=40 * 1024 * 1024,
        ),
    )(x2, w2, b2)

    if H_pad != H:
        out = out[:, :H]
    return out.reshape(orig_shape)


def layer_norm_forward(inp, weight, bias, eps=1e-5, embedding=None):
    """Mirrors LayerNorm.forward: tuple input passes the embedding through."""
    if isinstance(inp, tuple):
        inp, embedding = inp
        return layer_norm_pallas(inp, weight, bias, eps), embedding
    assert embedding is None
    return layer_norm_pallas(inp, weight, bias, eps)


def layer_norm_ref(x, weight, bias, eps=1e-5):
    xf = x.astype(jnp.float32)
    mean = jnp.mean(xf, axis=-1, keepdims=True)
    var = jnp.mean((xf - mean) ** 2, axis=-1, keepdims=True)
    y = (xf - mean) * lax.rsqrt(var + eps)
    return (y * weight.astype(jnp.float32) + bias.astype(jnp.float32)).astype(x.dtype)


if __name__ == "__main__":
    key = jax.random.PRNGKey(0)
    B, T, H = 2, 8, 32

    x = jax.random.normal(key, (B, T, H), dtype=jnp.float32)

    # Parameters as initialized by LayerNorm.reset_parameters(): ones / zeros.
    weight = jnp.ones((H,), dtype=jnp.float32)
    bias = jnp.zeros((H,), dtype=jnp.float32)

    out = layer_norm_forward(x, weight, bias, eps=1e-5)
    out = jax.block_until_ready(out)
    ref = layer_norm_ref(x, weight, bias, eps=1e-5)
    assert out.shape == x.shape
    assert jnp.allclose(out, ref, atol=1e-5, rtol=1e-5), "mismatch vs reference"

    # Ragged row count (tail block) + padded-H path.
    x_odd = jax.random.normal(jax.random.PRNGKey(1), (3, 7, H), dtype=jnp.float32)
    out_odd = jax.block_until_ready(layer_norm_pallas(x_odd, weight, bias))
    assert jnp.allclose(out_odd, layer_norm_ref(x_odd, weight, bias),
                        atol=1e-5, rtol=1e-5), "mismatch on ragged rows"

    # Already-lane-dense H (no padding path), f32.
    H2 = 256
    x_big = jax.random.normal(jax.random.PRNGKey(2), (4, 3, H2), dtype=jnp.float32)
    w2 = jax.random.normal(jax.random.PRNGKey(3), (H2,), dtype=jnp.float32)
    b2 = jax.random.normal(jax.random.PRNGKey(4), (H2,), dtype=jnp.float32)
    out_big = jax.block_until_ready(layer_norm_pallas(x_big, w2, b2))
    assert jnp.allclose(out_big, layer_norm_ref(x_big, w2, b2),
                        atol=1e-5, rtol=1e-5), "mismatch on H=256"

    # bf16 path (16-row native sublane tile).
    x_bf = jax.random.normal(jax.random.PRNGKey(5), (5, 6, H), dtype=jnp.bfloat16)
    out_bf = jax.block_until_ready(
        layer_norm_pallas(x_bf, weight.astype(jnp.bfloat16), bias.astype(jnp.bfloat16)))
    ref_bf = layer_norm_ref(x_bf, weight, bias)
    assert jnp.allclose(out_bf.astype(jnp.float32), ref_bf.astype(jnp.float32),
                        atol=2e-2, rtol=2e-2), "mismatch on bf16"

    # Tuple-input forward (embedding passthrough), like the PyTorch module.
    y_tuple, emb = layer_norm_forward((x, jnp.arange(4.0)), weight, bias)
    jax.block_until_ready(y_tuple)
    assert emb.shape == (4,)

    print("KERNEL_OK")
</pallas_src>

<mosaic_0001>
module attributes {stable_mosaic.version = 11 : i64} {
  func.func @_layernorm_kernel(%arg0: i32, %arg1: memref<8x128xf32, #tpu.memory_space<vmem>>, %arg2: memref<1x128xf32, #tpu.memory_space<vmem>>, %arg3: memref<1x128xf32, #tpu.memory_space<vmem>>, %arg4: memref<8x128xf32, #tpu.memory_space<vmem>>) attributes {dimension_semantics = [#tpu.dimension_semantics<parallel>], iteration_bounds = array<i64: 2>, scalar_prefetch = 0 : i64, scratch_operands = 0 : i64, tpu.core_type = #tpu.core_type<tc>, window_params = [{transform_indices = @transform_0, window_bounds = array<i64: 8, 128>}, {pipeline_mode = #tpu.pipeline_mode<synchronous>, transform_indices = @transform_1, window_bounds = array<i64: 1, 128>}, {pipeline_mode = #tpu.pipeline_mode<synchronous>, transform_indices = @transform_2, window_bounds = array<i64: 1, 128>}, {transform_indices = @transform_3, window_bounds = array<i64: 8, 128>}]} {
    %c0 = arith.constant 0 : index
    %c0_0 = arith.constant 0 : index
    %0 = vector.load %arg1[%c0, %c0_0] : memref<8x128xf32, #tpu.memory_space<vmem>>, vector<8x128xf32>
    %cst = arith.constant dense<0.000000e+00> : vector<8xf32>
    %1 = vector.multi_reduction <add>, %0, %cst [1] : vector<8x128xf32> to vector<8xf32>
    %2 = vector.shape_cast %1 : vector<8xf32> to vector<8x1xf32>
    %cst_1 = arith.constant 3.125000e-02 : f32
    %3 = vector.broadcast %cst_1 : f32 to vector<8x1xf32>
    %4 = arith.mulf %2, %3 : vector<8x1xf32>
    %5 = vector.broadcast %4 : vector<8x1xf32> to vector<8x128xf32>
    %6 = arith.subf %0, %5 : vector<8x128xf32>
    %7 = tpu.iota {dimensions = array<i32: 1>} : vector<1x128xi32>
    %c32_i32 = arith.constant 32 : i32
    %8 = vector.broadcast %c32_i32 : i32 to vector<1x128xi32>
    %9 = arith.cmpi slt, %7, %8 : vector<1x128xi32>
    %cst_2 = arith.constant 0.000000e+00 : f32
    %10 = vector.shape_cast %9 : vector<1x128xi1> to vector<1x128xi1>
    %11 = vector.broadcast %10 : vector<1x128xi1> to vector<8x128xi1>
    %12 = vector.broadcast %cst_2 : f32 to vector<8x128xf32>
    %13 = arith.select %11, %6, %12 : vector<8x128xi1>, vector<8x128xf32>
    %14 = arith.mulf %13, %13 : vector<8x128xf32>
    %cst_3 = arith.constant dense<0.000000e+00> : vector<8xf32>
    %15 = vector.multi_reduction <add>, %14, %cst_3 [1] : vector<8x128xf32> to vector<8xf32>
    %16 = vector.shape_cast %15 : vector<8xf32> to vector<8x1xf32>
    %cst_4 = arith.constant 3.125000e-02 : f32
    %17 = vector.broadcast %cst_4 : f32 to vector<8x1xf32>
    %18 = arith.mulf %16, %17 : vector<8x1xf32>
    %cst_5 = arith.constant 9.99999974E-6 : f32
    %19 = vector.broadcast %cst_5 : f32 to vector<8x1xf32>
    %20 = arith.addf %18, %19 : vector<8x1xf32>
    %21 = math.rsqrt %20 : vector<8x1xf32>
    %22 = vector.broadcast %21 : vector<8x1xf32> to vector<8x128xf32>
    %23 = arith.mulf %6, %22 : vector<8x128xf32>
    %c0_6 = arith.constant 0 : index
    %c0_7 = arith.constant 0 : index
    %24 = vector.load %arg2[%c0_6, %c0_7] : memref<1x128xf32, #tpu.memory_space<vmem>>, vector<1x128xf32>
    %25 = vector.broadcast %24 : vector<1x128xf32> to vector<8x128xf32>
    %26 = arith.mulf %23, %25 : vector<8x128xf32>
    %c0_8 = arith.constant 0 : index
    %c0_9 = arith.constant 0 : index
    %27 = vector.load %arg3[%c0_8, %c0_9] : memref<1x128xf32, #tpu.memory_space<vmem>>, vector<1x128xf32>
    %28 = vector.broadcast %27 : vector<1x128xf32> to vector<8x128xf32>
    %29 = arith.addf %26, %28 : vector<8x128xf32>
    %c0_10 = arith.constant 0 : index
    %c0_11 = arith.constant 0 : index
    %30 = vector.load %arg4[%c0_10, %c0_11] : memref<8x128xf32, #tpu.memory_space<vmem>>, vector<8x128xf32>
    tpu.vector_store %arg4[%c0_10, %c0_11], %29 {strides = array<i32>} : memref<8x128xf32, #tpu.memory_space<vmem>>, vector<8x128xf32>,
    return
  }
  func.func @transform_0(%arg0: i32) -> (i32, i32) {
    %c0_i32 = arith.constant 0 : i32
    %c0_i32_0 = arith.constant 0 : i32
    return %arg0, %c0_i32 : i32, i32
  }
  func.func @transform_1(%arg0: i32) -> (i32, i32) {
    %c0_i32 = arith.constant 0 : i32
    %c0_i32_0 = arith.constant 0 : i32
    %c0_i32_1 = arith.constant 0 : i32
    return %c0_i32, %c0_i32_0 : i32, i32
  }
  func.func @transform_2(%arg0: i32) -> (i32, i32) {
    %c0_i32 = arith.constant 0 : i32
    %c0_i32_0 = arith.constant 0 : i32
    %c0_i32_1 = arith.constant 0 : i32
    return %c0_i32, %c0_i32_0 : i32, i32
  }
  func.func @transform_3(%arg0: i32) -> (i32, i32) {
    %c0_i32 = arith.constant 0 : i32
    %c0_i32_0 = arith.constant 0 : i32
    return %arg0, %c0_i32 : i32, i32
  }
}

</mosaic_0001>

<bundles_post_ra>
// kernel: tpu_custom_call.1
= control target key start
LH: loop header
LB: loop body
LE: loop exit
PB: predicated region body
PF: predicated region fallthrough
CT: control target
= control target key end

     0   :  { %8 = vsyncpa [#allocation3], 0  ;;  %s630_s0 = inlined_call_operand.hbm [shape: f32[16,128], index: 0, kind: input, shape index: {}]   ;;  %s631_s1 = inlined_call_operand.vmem [shape: f32[1,128], index: 1, kind: input, shape index: {}]   ;;  %s632_s2 = inlined_call_operand.vmem [shape: f32[1,128], index: 2, kind: input, shape index: {}]   ;;  %s633_s3 = inlined_call_operand.hbm [shape: f32[16,128], index: 3, kind: output, shape index: {}]  }
   0x1   :  { %10 = vsyncpa [#allocation3 + $0x1], 0 }
   0x2   :  { %11 = vsyncpa [#allocation4], 0 }
   0x3   :  { %13 = vsyncpa [#allocation4 + $0x1], 0  ;;  %s483_s12 = smov 0   ;;  %s485_s13 = smov 0  }
   0x4   :  { %s487_s14 = smov 0   ;;  %s489_s15 = smov 0  }
   0x5 LB: > { %s504_s16 = sadd.s32 4294967295, %s459_s15   ;;  %s305_s17 = sadd.s32 4294967294, %s459_s15   ;;  %s459_s15 = sphi %s489_s15, %s650_s15   ;;  %s455_s14 = sphi %s487_s14, %s649_s14   ;;  %s451_s13 = sphi %s485_s13, %s648_s13   ;;  %s447_s12 = sphi %s483_s12, %s647_s12  }
   0x6   : > { %s508_s18 = sadd.s32 1, %s459_s15   ;;  %s26_s19 = sadd.s32 1, %s455_s14 }
   0x7   : > { %s23_s20 = ssub.s32 %s459_s15, %s508_s18  ;;  %p33_p0 = scmp.ne.s32.totalorder %s455_s14, %s451_s13 }
   0x8   : > { %p24_p1 = scmp.eq.s32.totalorder %s23_s20, 0  ;;  %p34_p2 = scmp.eq.s32.totalorder %s459_s15, 0 }
   0x9   : > { %p39_p3 = scmp.ne.s32.totalorder %s451_s13, %s447_s12  ;;  %p40_p4 = scmp.eq.s32.totalorder %s504_s16, 0 }
   0xa   : > { %s520_s21 = scalar_select %p24_p1, %s455_s14, %s26_s19  }
   0xb   : > { %p522_p5 = por %p34_p2, %p33_p0  ;;  %p526_p6 = por %p40_p4, %p39_p3 }
   0xc   : > { %p105_p7 = scmp.eq.s32.totalorder %s504_s16, 1  ;;  %p111_p8 = scmp.eq.s32.totalorder %s305_s17, 1 }
   0xd   : > { %s637_s23 = scalar_select %p526_p6, 1, 0 }
   0xe   : > { %p331_p10 = scmp.lt.s32.totalorder %s459_s15, 2  ;;  %p533_p11 = por %p105_p7, %p33_p0 }
   0xf   : > { %p537_p12 = por %p111_p8, %p39_p3  ;;  %s137_s26 = sand.u32 1, %s455_s14  }
  0x10   : > { %s638_s24 = scalar_select %p533_p11, 1, 0 }
  0x11   : > { %s639_s25 = scalar_select %p537_p12, 1, 0 }
  0x12   : > { %s309_s27 = sshll.u32 %s459_s15, 7  ;;  %s308_s28 = sshll.u32 %s137_s26, 3 }
  0x13   : > { %s546_s4 = scalar_lea.hbm %s630_s0, %s309_s27  ;;  %s141_s5 = scalar_lea.vmem [#allocation2], %s308_s28 }
  0x14   : > { %s148_s6 = sshll.u32 %s141_s5, 4  ;;  %p550_p13 = pnand %p331_p10, %p522_p5  ;;  %s554_s6 = int_to_ptr.vmem [resolvable:$true] %s148_s6 }
  0x15   : > { %s138_s8 = scalar_lea.sflag [#allocation3], %s137_s26  ;;  %s367_s9 = scalar_lea.hbm %s546_s4, 128 }
  0x16   : > { %p368_p2 = scmp.ne.s32.totalorder %s546_s4, %s367_s9  ;;  %p369_p3 = pneg %p550_p13 }
  0x17   : > { %s372_s17 = scalar_lea.hbm %s630_s0, 256  ;;  %p373_p5 = scmp.lt.s32.totalorder %s546_s4, %s630_s0 }
  0x18   : > { %p370_p4 = pnand %p369_p3, %p368_p2  ;;  %p374_p8 = scmp.lt.s32.totalorder %s372_s17, %s367_s9 }
  0x1a   : > { %p371_p7 = pneg %p370_p4  ;;  %p375_p10 = por %p374_p8, %p373_p5 }
  0x1c   : > { %p376_p9 = pnand %p375_p10, %p371_p7 }
  0x1e   : > { %379 = shalt.err (!%p376_p9)
}
  0x1f   : > { %s380_s22 = scalar_lea.vmem %s554_s6, 128  ;;  %s461_s26 = smov [#allocation2]  }
  0x20   : > { %p381_p0 = scmp.ne.s32.totalorder %s554_s6, %s380_s22  ;;  %s385_s27 = sshll.u32 %s461_s26, 4  ;;  %s386_s27 = int_to_ptr.vmem [resolvable:$false] %s385_s27 }
  0x21   : > { %s387_s28 = scalar_lea.vmem %s386_s27, 256  ;;  %p388_p4 = scmp.lt.s32.totalorder %s554_s6, %s386_s27 }
  0x22   : > { %p383_p1 = pnand %p381_p0, %p369_p3  ;;  %p389_p12 = scmp.lt.s32.totalorder %s387_s28, %s380_s22 }
  0x24   : > { %p384_p2 = pneg %p383_p1  ;;  %p390_p11 = por %p389_p12, %p388_p4 }
  0x26   : > { %p391_p6 = pnand %p390_p11, %p384_p2 }
  0x28   : > { %394 = shalt.err (!%p391_p6)
}
  0x29   : > { %326 = dma.hbm_to_vmem [thread:$0]  (!%p550_p13), %s546_s4, 128, %s554_s6, %s138_s8  }
  0x2a   : > { %p641_p9 = scmp.lt.s32.totalorder %s459_s15, 3  ;;  %p642_p7 = scmp.ge.s32.totalorder %s459_s15, 1 }
  0x2c   : > { %p154_p0 = pnand %p642_p7, %p641_p9 }
  0x2d   : > { %s581_s29 = sand.u32 (!%p154_p0), 1, %s451_s13   ;;  %p643_p6 = scmp.ne.s32.totalorder (!%p154_p0), %s637_s23, 0 }
  0x2e   : > { %157 = sbr.rel (%p154_p0) target bundleno = 373 (0x175), region = 32  ;;  %s311_s30 = sshll.u32 (!%p154_p0), %s581_s29, 3 }
  0x2f   : > { %s160_s5 = scalar_lea.sflag (!%p154_p0), [#allocation3], %s581_s29  ;;  %s163_s9 = scalar_lea.vmem (!%p154_p0), [#allocation2], %s311_s30 }
  0x33   : > { %438 = dma.done.wait (%p643_p6), %s160_s5, 128  }
  0x34   : > { %440 = vsyncadd (%p643_p6), %s160_s5, 4294967168  ;;  %v186_v0 = vld [vmem:[%s163_s9] sm:$0xff]  ;;  %v191_v1 = vlaneseq  ;;  %s316_s8 = sshll.u32 %s504_s16, 7  ;;  %s185_s10 = scalar_lea.vmem [#allocation5], %s311_s30 }
  0x35   : > { %187 = vadd.xlane.f32.xlu0 %v186_v0  ;;  %v313_v12 = vld [vmem:[%s631_s1] ss:$0 sm:$0xff]  ;;  %s235_s11 = sshll.u32 %s185_s10, 4  ;;  %s233_s20 = scalar_lea.hbm %s633_s3, %s316_s8  ;;  %s236_s11 = int_to_ptr.vmem [resolvable:$true] %s235_s11 }
  0x36   : > { %v192_v2 = vand.u32 127, %v191_v1  ;;  %v314_v14 = vld [vmem:[%s632_s2] ss:$0 sm:$0xff]  ;;  %s222_s22 = scalar_lea.sflag [#allocation4], %s581_s29  ;;  %s395_s26 = scalar_lea.vmem %s236_s11, 128 }
  0x37   : > { %p396_p11 = scmp.ne.s32.totalorder %s236_s11, %s395_s26  ;;  %p644_p12 = scmp.ne.s32.totalorder %s638_s24, 0 }
  0x38   : > { %vm193_vm0 = vcmp.lt.s32.totalorder %v192_v2, 32  ;;  %s462_s27 = smov [#allocation5]  }
  0x39   : > { %p397_p13 = pnand %p396_p11, %p644_p12  ;;  %s399_s28 = sshll.u32 %s462_s27, 4  ;;  %s400_s28 = int_to_ptr.vmem [resolvable:$false] %s399_s28 }
  0x3a   : > { %s401_s16 = scalar_lea.vmem %s400_s28, 256  ;;  %p402_p3 = scmp.lt.s32.totalorder %s236_s11, %s400_s28 }
  0x3b   : > { %p398_p1 = pneg %p397_p13  ;;  %p403_p5 = scmp.lt.s32.totalorder %s401_s16, %s395_s26 }
  0x3d   : > { %p404_p8 = por %p403_p5, %p402_p3 }
  0x3f   : > { %p405_p10 = pnand %p404_p8, %p398_p1 }
  0xbe   : > { %v188_v3 = vpop.xlane.xlu0 %187 }
  0xbf   : > { %v189_v4 = vmul.f32 0.03125, %v188_v3 }
  0xc1   : > { %v190_v5 = vsub.f32 %v186_v0, %v189_v4 }
  0xc3   : > { %v196_v6 = vsel %vm193_vm0, %v190_v5, 0.0 }
  0xc4   : > { %v197_v7 = vmul.f32 %v196_v6, %v196_v6 }
  0xc6   : > { %198 = vadd.xlane.f32.xlu0 %v197_v7 }
 0x14f   : > { %v199_v8 = vpop.xlane.xlu0 %198 }
 0x150   : > { %v200_v9 = vmul.f32 0.03125, %v199_v8 }
 0x152   : > { %v201_v10 = vadd.f32 1e-05, %v200_v9 }
 0x154   : > { %365 = vrsqrt.f32 %v201_v10 }
 0x161   : > { %v366_v11 = vpop.eup %365 }
 0x162   : > { %v203_v13 = vmul.f32 %v366_v11, %v190_v5 }
 0x164   : > { %v211_v15 = vmul.f32 %v313_v12, %v203_v13 }
 0x166   : > { %v219_v16 = vadd.f32 %v314_v14, %v211_v15 }
 0x168   : > { %220 = vst [vmem:[%s185_s10] sm:$0xff] %v219_v16 }
 0x169   : > { %408 = shalt.err (!%p405_p10)
}
 0x16a   : > { %s409_s30 = scalar_lea.hbm %s233_s20, 128  ;;  %s413_s9 = scalar_lea.hbm %s633_s3, 256 }
 0x16b   : > { %p410_p2 = scmp.ne.s32.totalorder %s233_s20, %s409_s30  ;;  %p414_p7 = scmp.lt.s32.totalorder %s233_s20, %s633_s3 }
 0x16c   : > { %p415_p0 = scmp.lt.s32.totalorder %s413_s9, %s409_s30 }
 0x16d   : > { %p411_p4 = pnand %p410_p2, %p644_p12 }
 0x16e   : > { %p416_p6 = por %p415_p0, %p414_p7 }
 0x16f   : > { %p412_p9 = pneg %p411_p4 }
 0x171   : > { %p417_p11 = pnand %p416_p6, %p412_p9 }
 0x173   : > { %420 = shalt.err (!%p417_p11)
}
 0x174   : > { %321 = dma.vmem_to_hbm [thread:$0]  (%p644_p12), %s236_s11, 128, %s233_s20, %s222_s22  }
 0x175 PF: > { %s247_s6 = sand.u32 1, %s447_s12   ;;  %p645_p13 = scmp.ne.s32.totalorder %s639_s25, 0 }
 0x176   : > { %p646_p1 = scmp.ge.s32.totalorder %s459_s15, 2  ;;  %s248_s7 = scalar_lea.sflag [#allocation4], %s247_s6 }
 0x178   : > { %p328_p3 = pnand %p646_p1, %p645_p13 }
 0x17a   : > { %p329_p5 = pneg %p328_p3 }
 0x17c   : > { %442 = dma.done.wait (%p329_p5), %s248_s7, 128  }
 0x17d   : > { %444 = vsyncadd (%p329_p5), %s248_s7, 4294967168  ;;  %p16_p8 = scmp.ge.s32.totalorder %s508_s18, 4   ;;  %s647_s12 = smov %s451_s13 }
 0x17e   : > { %s648_s13 = smov %s455_s14  ;;  %s649_s14 = smov %s520_s21 }
 0x17f   : > { %s650_s15 = smov %s508_s18  ;;  %18 = sbr.rel (!%p16_p8) target bundleno = 5 (0x5), region = 77 }
 0x184   :  { %253 = vsyncpa [#allocation3], 1 }
 0x185   :  { %255 = vsyncpa [#allocation3 + $0x1], 1 }
 0x186   :  { %256 = vsyncpa [#allocation4], 1 }
 0x187   :  { %258 = vsyncpa [#allocation4 + $0x1], 1 }

</bundles_post_ra>
